<compile_context>
chip_gen: v5e
topology: v5e:2x2
jax: 0.10.0
libtpu: 0.0.40
codegen_flags: <defaults>
</compile_context>

<pallas_src>
import jax
import jax.numpy as jnp
from jax.experimental import pallas as pl
from jax.experimental.pallas import tpu as pltpu

# ---------------------------------------------------------------------------
# Model hyper-parameters (small, consistent with the module's __init__)
# ---------------------------------------------------------------------------
BATCH = 2
SEQ = 8
HIDDEN = 32
N_HEADS = 4
HEAD_DIM = HIDDEN // N_HEADS
INTERMEDIATE = 64
EPS = 1e-6
RESIDUAL_MULTIPLIER = 1.0
ROPE_THETA = 10000.0
NEG_INF = -1e30


# ---------------------------------------------------------------------------
# In-kernel helpers (traced inside the Pallas kernel)
# ---------------------------------------------------------------------------
def _rmsnorm(x, gamma):
    var = jnp.mean(x * x, axis=-1, keepdims=True)
    return x * jax.lax.rsqrt(var + EPS) * gamma


# ---------------------------------------------------------------------------
# Fused Layer kernel: single invocation, all B*T tokens at once.
# ---------------------------------------------------------------------------
def layer_kernel(x_ref, gamma_ref, cos2_ref, sin2_ref, mask_ref, rope2_ref,
                 wqkv_ref, wo_ref, wgu_ref, wd_ref, out_ref):
    D, I, hd = HIDDEN, INTERMEDIATE, HEAD_DIM
    BT = BATCH * SEQ

    x = x_ref[...]                 # (B*T, D)
    gamma = gamma_ref[...]         # (1, D)
    mask = mask_ref[...]           # (B*T, B*T) block-diag causal additive mask
    wo = wo_ref[...]               # (D, D)

    # ---- input_layernorm (RMSNorm) on all tokens ----
    xn = _rmsnorm(x, gamma)

    # ---- fused Q/K/V projection (1/sqrt(hd) already folded into Q cols) ----
    qkv = jnp.dot(xn, wqkv_ref[...], preferred_element_type=jnp.float32)  # (BT, 3D)
    qk = qkv[:, :2 * D]            # (BT, 2D)  q || k
    v = qkv[:, 2 * D:]             # (BT, D)

    # ---- RoPE on Q and K together: one (2D, 2D) block-diag rotate matmul ----
    qk = (qk * cos2_ref[...]
          + jnp.dot(qk, rope2_ref[...], preferred_element_type=jnp.float32)
          * sin2_ref[...])
    q = qk[:, :D]
    k = qk[:, D:]

    # ---- causal attention: all batches at once per head (block-diag mask),
    #      head concat folded into the output projection Wo ----
    acc = jnp.zeros((BT, D), jnp.float32)
    for h in range(N_HEADS):                       # static unroll, H = 4
        c0 = h * hd
        qh = q[:, c0:c0 + hd]                      # (BT, hd)
        kh = k[:, c0:c0 + hd]
        vh = v[:, c0:c0 + hd]
        # q_h @ k_h^T without an explicit transpose (contract last dims)
        s = jax.lax.dot_general(qh, kh, (((1,), (1,)), ((), ())),
                                preferred_element_type=jnp.float32) + mask
        m = jnp.max(s, axis=-1, keepdims=True)
        e = jnp.exp(s - m)
        p = e * pl.reciprocal(jnp.sum(e, axis=-1, keepdims=True), approx=True)
        oh = jnp.dot(p, vh, preferred_element_type=jnp.float32)          # (BT, hd)
        acc = acc + jnp.dot(oh, wo[c0:c0 + hd, :],
                            preferred_element_type=jnp.float32)          # (BT, D)

    # ---- residual; pre_ffnn_layernorm OVERWRITES residual (same gamma) ----
    residual = x + acc * RESIDUAL_MULTIPLIER
    residual = _rmsnorm(residual, gamma)

    # ---- SwiGLU MLP, fused gate|up -> lane-dense (B*T, 2I) = (16, 128) ----
    gu = jnp.dot(residual, wgu_ref[...], preferred_element_type=jnp.float32)
    g = gu[:, :I]
    u = gu[:, I:]
    sig = pl.reciprocal(1.0 + jnp.exp(-g), approx=True)   # silu sigmoid on EUP
    mlp_out = jnp.dot((g * sig) * u, wd_ref[...],
                      preferred_element_type=jnp.float32)

    out_ref[...] = residual + mlp_out * RESIDUAL_MULTIPLIER


# ---------------------------------------------------------------------------
# One-time parameter / table transforms (done outside the kernel, once)
# ---------------------------------------------------------------------------
def prepare_inputs(params, cos, sin, batch):
    scale = 1.0 / (HEAD_DIM ** 0.5)
    wqkv = jnp.concatenate(
        [params["wq"] * scale, params["wk"], params["wv"]], axis=1)      # (D, 3D)
    wgu = jnp.concatenate([params["wg"], params["wu"]], axis=1)          # (D, 2I)

    # rotate_half as a constant block-diagonal permutation matrix (t @ P)
    half = HEAD_DIM // 2
    p_head = jnp.block(
        [[jnp.zeros((half, half), jnp.float32), jnp.eye(half, dtype=jnp.float32)],
         [-jnp.eye(half, dtype=jnp.float32), jnp.zeros((half, half), jnp.float32)]])
    rope_perm = jnp.kron(jnp.eye(N_HEADS, dtype=jnp.float32), p_head)    # (D, D)
    rope_perm2 = jnp.kron(jnp.eye(2, dtype=jnp.float32), rope_perm)      # (2D, 2D)

    # cos/sin tiled across (q,k) x heads (axis 1) and batch (axis 0) -> (B*T, 2D)
    cos2 = jnp.tile(cos, (batch, 2 * N_HEADS))
    sin2 = jnp.tile(sin, (batch, 2 * N_HEADS))

    # additive causal mask, block-diagonal over batches: (B*T, B*T)
    T = cos.shape[0]
    BT = batch * T
    rows = jnp.arange(BT)
    same_batch = (rows[:, None] // T) == (rows[None, :] // T)
    causal = (rows[:, None] % T) >= (rows[None, :] % T)
    mask = jnp.where(same_batch & causal, 0.0, NEG_INF).astype(jnp.float32)

    return {
        "gamma": params["gamma"], "wqkv": wqkv, "wo": params["wo"],
        "wgu": wgu, "wd": params["wd"], "rope_perm2": rope_perm2,
        "cos2": cos2, "sin2": sin2, "mask": mask,
    }


# ---------------------------------------------------------------------------
# Wrapper: single pallas_call, whole arrays in VMEM (no grid)
# ---------------------------------------------------------------------------
@jax.jit
def layer_forward(x, prep):
    B, T, D = x.shape
    x2 = x.reshape(B * T, D)                 # flatten tokens outside the kernel
    vmem = pl.BlockSpec(memory_space=pltpu.MemorySpace.VMEM)
    out = pl.pallas_call(
        layer_kernel,
        out_shape=jax.ShapeDtypeStruct((B * T, D), jnp.float32),
        in_specs=[vmem] * 10,
        out_specs=vmem,
    )(x2, prep["gamma"], prep["cos2"], prep["sin2"], prep["mask"],
      prep["rope_perm2"], prep["wqkv"], prep["wo"], prep["wgu"], prep["wd"])
    return out.reshape(B, T, D)


# ---------------------------------------------------------------------------
# Pure-JAX reference (raw, un-fused params -> also validates the weight prep)
# ---------------------------------------------------------------------------
def layer_reference(x, cos, sin, p):
    def rms(v):
        return v * jax.lax.rsqrt(jnp.mean(v * v, -1, keepdims=True) + EPS) * p["gamma"]

    def rope(t):
        h = t.shape[-1] // 2
        rot = jnp.concatenate([-t[..., h:], t[..., :h]], axis=-1)
        return t * cos[None, :, None, :] + rot * sin[None, :, None, :]

    B, T, D = x.shape
    xn = rms(x)
    q = (xn @ p["wq"]).reshape(B, T, N_HEADS, HEAD_DIM)
    k = (xn @ p["wk"]).reshape(B, T, N_HEADS, HEAD_DIM)
    v = (xn @ p["wv"]).reshape(B, T, N_HEADS, HEAD_DIM)
    q, k = rope(q), rope(k)
    s = jnp.einsum("bqhd,bkhd->bhqk", q, k) / (HEAD_DIM ** 0.5)
    causal = jnp.tril(jnp.ones((T, T), bool))
    s = jnp.where(causal[None, None], s, NEG_INF)
    a = jax.nn.softmax(s, axis=-1)
    o = jnp.einsum("bhqk,bkhd->bqhd", a, v).reshape(B, T, D) @ p["wo"]
    residual = x + o * RESIDUAL_MULTIPLIER
    residual = rms(residual)
    m = jax.nn.silu(residual @ p["wg"]) * (residual @ p["wu"])
    return residual + (m @ p["wd"]) * RESIDUAL_MULTIPLIER


# ---------------------------------------------------------------------------
if __name__ == "__main__":
    key = jax.random.PRNGKey(0)
    ks = jax.random.split(key, 8)

    x = jax.random.normal(ks[0], (BATCH, SEQ, HIDDEN), jnp.float32)

    # Deterministic parameter init (synthetic; shapes from Layer.__init__ deps).
    params = {
        "gamma": jnp.ones((1, HIDDEN), jnp.float32),
        "wq": 0.02 * jax.random.normal(ks[1], (HIDDEN, HIDDEN), jnp.float32),
        "wk": 0.02 * jax.random.normal(ks[2], (HIDDEN, HIDDEN), jnp.float32),
        "wv": 0.02 * jax.random.normal(ks[3], (HIDDEN, HIDDEN), jnp.float32),
        "wo": 0.02 * jax.random.normal(ks[4], (HIDDEN, HIDDEN), jnp.float32),
        "wg": 0.02 * jax.random.normal(ks[5], (HIDDEN, INTERMEDIATE), jnp.float32),
        "wu": 0.02 * jax.random.normal(ks[6], (HIDDEN, INTERMEDIATE), jnp.float32),
        "wd": 0.02 * jax.random.normal(ks[7], (INTERMEDIATE, HIDDEN), jnp.float32),
    }

    # Rotary position embeddings (cos/sin tables), shape [T, head_dim].
    pos = jnp.arange(SEQ, dtype=jnp.float32)[:, None]
    inv_freq = 1.0 / (ROPE_THETA ** (jnp.arange(0, HEAD_DIM, 2, dtype=jnp.float32) / HEAD_DIM))
    freqs = pos * inv_freq[None, :]                      # (T, head_dim/2)
    emb = jnp.concatenate([freqs, freqs], axis=-1)       # (T, head_dim)
    cos, sin = jnp.cos(emb), jnp.sin(emb)

    prep = prepare_inputs(params, cos, sin, BATCH)       # one-time transforms

    out = layer_forward(x, prep)
    out = jax.block_until_ready(out)

    ref = layer_reference(x, cos, sin, params)
    assert out.shape == (BATCH, SEQ, HIDDEN)
    assert jnp.allclose(out, ref, atol=5e-3, rtol=5e-3), "mismatch vs JAX reference"

    print("KERNEL_OK")
</pallas_src>

<mosaic_0001>
module attributes {stable_mosaic.version = 11 : i64} {
  func.func @layer_kernel(%arg0: memref<16x32xf32, #tpu.memory_space<vmem>>, %arg1: memref<1x32xf32, #tpu.memory_space<vmem>>, %arg2: memref<16x64xf32, #tpu.memory_space<vmem>>, %arg3: memref<16x64xf32, #tpu.memory_space<vmem>>, %arg4: memref<16x16xf32, #tpu.memory_space<vmem>>, %arg5: memref<64x64xf32, #tpu.memory_space<vmem>>, %arg6: memref<32x96xf32, #tpu.memory_space<vmem>>, %arg7: memref<32x32xf32, #tpu.memory_space<vmem>>, %arg8: memref<32x128xf32, #tpu.memory_space<vmem>>, %arg9: memref<64x32xf32, #tpu.memory_space<vmem>>, %arg10: memref<16x32xf32, #tpu.memory_space<vmem>>) attributes {dimension_semantics = [], scalar_prefetch = 0 : i64, scratch_operands = 0 : i64, tpu.core_type = #tpu.core_type<tc>} {
    %c0 = arith.constant 0 : index
    %c0_0 = arith.constant 0 : index
    %0 = vector.load %arg0[%c0, %c0_0] : memref<16x32xf32, #tpu.memory_space<vmem>>, vector<16x32xf32>
    %c0_1 = arith.constant 0 : index
    %c0_2 = arith.constant 0 : index
    %1 = vector.load %arg1[%c0_1, %c0_2] : memref<1x32xf32, #tpu.memory_space<vmem>>, vector<1x32xf32>
    %c0_3 = arith.constant 0 : index
    %c0_4 = arith.constant 0 : index
    %2 = vector.load %arg4[%c0_3, %c0_4] : memref<16x16xf32, #tpu.memory_space<vmem>>, vector<16x16xf32>
    %c0_5 = arith.constant 0 : index
    %c0_6 = arith.constant 0 : index
    %3 = vector.load %arg7[%c0_5, %c0_6] : memref<32x32xf32, #tpu.memory_space<vmem>>, vector<32x32xf32>
    %4 = arith.mulf %0, %0 : vector<16x32xf32>
    %cst = arith.constant dense<0.000000e+00> : vector<16xf32>
    %5 = vector.multi_reduction <add>, %4, %cst [1] : vector<16x32xf32> to vector<16xf32>
    %6 = vector.shape_cast %5 : vector<16xf32> to vector<16x1xf32>
    %cst_7 = arith.constant 3.200000e+01 : f32
    %7 = vector.broadcast %cst_7 : f32 to vector<16x1xf32>
    %8 = arith.divf %6, %7 : vector<16x1xf32>
    %cst_8 = arith.constant 9.99999997E-7 : f32
    %9 = vector.broadcast %cst_8 : f32 to vector<16x1xf32>
    %10 = arith.addf %8, %9 : vector<16x1xf32>
    %11 = math.rsqrt %10 : vector<16x1xf32>
    %12 = vector.broadcast %11 : vector<16x1xf32> to vector<16x32xf32>
    %13 = arith.mulf %0, %12 : vector<16x32xf32>
    %14 = vector.broadcast %1 : vector<1x32xf32> to vector<16x32xf32>
    %15 = arith.mulf %13, %14 : vector<16x32xf32>
    %c0_9 = arith.constant 0 : index
    %c0_10 = arith.constant 0 : index
    %16 = vector.load %arg6[%c0_9, %c0_10] : memref<32x96xf32, #tpu.memory_space<vmem>>, vector<32x96xf32>
    %cst_11 = arith.constant dense<0.000000e+00> : vector<16x96xf32>
    %17 = tpu.matmul %15, %16, %cst_11 {dimension_numbers = #tpu.dot_dimension_numbers<[1], [0], [0], [1], [0, 0, 1, 1], [], []>} : vector<16x32xf32>, vector<32x96xf32>, vector<16x96xf32> -> vector<16x96xf32>
    %18 = vector.extract_strided_slice %17 {offsets = [0, 0], sizes = [16, 64], strides = [1, 1]} : vector<16x96xf32> to vector<16x64xf32>
    %19 = vector.extract_strided_slice %17 {offsets = [0, 64], sizes = [16, 32], strides = [1, 1]} : vector<16x96xf32> to vector<16x32xf32>
    %c0_12 = arith.constant 0 : index
    %c0_13 = arith.constant 0 : index
    %20 = vector.load %arg2[%c0_12, %c0_13] : memref<16x64xf32, #tpu.memory_space<vmem>>, vector<16x64xf32>
    %21 = arith.mulf %18, %20 : vector<16x64xf32>
    %c0_14 = arith.constant 0 : index
    %c0_15 = arith.constant 0 : index
    %22 = vector.load %arg5[%c0_14, %c0_15] : memref<64x64xf32, #tpu.memory_space<vmem>>, vector<64x64xf32>
    %cst_16 = arith.constant dense<0.000000e+00> : vector<16x64xf32>
    %23 = tpu.matmul %18, %22, %cst_16 {dimension_numbers = #tpu.dot_dimension_numbers<[1], [0], [0], [1], [0, 0, 1, 1], [], []>} : vector<16x64xf32>, vector<64x64xf32>, vector<16x64xf32> -> vector<16x64xf32>
    %c0_17 = arith.constant 0 : index
    %c0_18 = arith.constant 0 : index
    %24 = vector.load %arg3[%c0_17, %c0_18] : memref<16x64xf32, #tpu.memory_space<vmem>>, vector<16x64xf32>
    %25 = arith.mulf %23, %24 : vector<16x64xf32>
    %26 = arith.addf %21, %25 : vector<16x64xf32>
    %27 = vector.extract_strided_slice %26 {offsets = [0, 0], sizes = [16, 32], strides = [1, 1]} : vector<16x64xf32> to vector<16x32xf32>
    %28 = vector.extract_strided_slice %26 {offsets = [0, 32], sizes = [16, 32], strides = [1, 1]} : vector<16x64xf32> to vector<16x32xf32>
    %cst_19 = arith.constant 0.000000e+00 : f32
    %29 = vector.broadcast %cst_19 : f32 to vector<16x32xf32>
    %30 = vector.extract_strided_slice %27 {offsets = [0, 0], sizes = [16, 8], strides = [1, 1]} : vector<16x32xf32> to vector<16x8xf32>
    %31 = vector.extract_strided_slice %28 {offsets = [0, 0], sizes = [16, 8], strides = [1, 1]} : vector<16x32xf32> to vector<16x8xf32>
    %32 = vector.extract_strided_slice %19 {offsets = [0, 0], sizes = [16, 8], strides = [1, 1]} : vector<16x32xf32> to vector<16x8xf32>
    %cst_20 = arith.constant dense<0.000000e+00> : vector<16x16xf32>
    %33 = tpu.matmul %30, %31, %cst_20 {dimension_numbers = #tpu.dot_dimension_numbers<[1], [1], [0], [0], [0, 0, 1, 0], [], []>} : vector<16x8xf32>, vector<16x8xf32>, vector<16x16xf32> -> vector<16x16xf32>
    %34 = arith.addf %33, %2 : vector<16x16xf32>
    %cst_21 = arith.constant dense<0xFF800000> : vector<16xf32>
    %35 = vector.multi_reduction <maximumf>, %34, %cst_21 [1] : vector<16x16xf32> to vector<16xf32>
    %36 = vector.shape_cast %35 : vector<16xf32> to vector<16x1xf32>
    %37 = vector.broadcast %36 : vector<16x1xf32> to vector<16x16xf32>
    %38 = arith.subf %34, %37 : vector<16x16xf32>
    %39 = math.exp %38 : vector<16x16xf32>
    %cst_22 = arith.constant dense<0.000000e+00> : vector<16xf32>
    %40 = vector.multi_reduction <add>, %39, %cst_22 [1] : vector<16x16xf32> to vector<16xf32>
    %41 = vector.shape_cast %40 : vector<16xf32> to vector<16x1xf32>
    %42 = tpu.reciprocal %41 {approx = true} : vector<16x1xf32> -> vector<16x1xf32>
    %43 = vector.broadcast %42 : vector<16x1xf32> to vector<16x16xf32>
    %44 = arith.mulf %39, %43 : vector<16x16xf32>
    %cst_23 = arith.constant dense<0.000000e+00> : vector<16x8xf32>
    %45 = tpu.matmul %44, %32, %cst_23 {dimension_numbers = #tpu.dot_dimension_numbers<[1], [0], [0], [1], [0, 0, 1, 1], [], []>} : vector<16x16xf32>, vector<16x8xf32>, vector<16x8xf32> -> vector<16x8xf32>
    %46 = vector.extract_strided_slice %3 {offsets = [0, 0], sizes = [8, 32], strides = [1, 1]} : vector<32x32xf32> to vector<8x32xf32>
    %cst_24 = arith.constant dense<0.000000e+00> : vector<16x32xf32>
    %47 = tpu.matmul %45, %46, %cst_24 {dimension_numbers = #tpu.dot_dimension_numbers<[1], [0], [0], [1], [0, 0, 1, 1], [], []>} : vector<16x8xf32>, vector<8x32xf32>, vector<16x32xf32> -> vector<16x32xf32>
    %48 = arith.addf %29, %47 : vector<16x32xf32>
    %49 = vector.extract_strided_slice %27 {offsets = [0, 8], sizes = [16, 8], strides = [1, 1]} : vector<16x32xf32> to vector<16x8xf32>
    %50 = vector.extract_strided_slice %28 {offsets = [0, 8], sizes = [16, 8], strides = [1, 1]} : vector<16x32xf32> to vector<16x8xf32>
    %51 = vector.extract_strided_slice %19 {offsets = [0, 8], sizes = [16, 8], strides = [1, 1]} : vector<16x32xf32> to vector<16x8xf32>
    %cst_25 = arith.constant dense<0.000000e+00> : vector<16x16xf32>
    %52 = tpu.matmul %49, %50, %cst_25 {dimension_numbers = #tpu.dot_dimension_numbers<[1], [1], [0], [0], [0, 0, 1, 0], [], []>} : vector<16x8xf32>, vector<16x8xf32>, vector<16x16xf32> -> vector<16x16xf32>
    %53 = arith.addf %52, %2 : vector<16x16xf32>
    %cst_26 = arith.constant dense<0xFF800000> : vector<16xf32>
    %54 = vector.multi_reduction <maximumf>, %53, %cst_26 [1] : vector<16x16xf32> to vector<16xf32>
    %55 = vector.shape_cast %54 : vector<16xf32> to vector<16x1xf32>
    %56 = vector.broadcast %55 : vector<16x1xf32> to vector<16x16xf32>
    %57 = arith.subf %53, %56 : vector<16x16xf32>
    %58 = math.exp %57 : vector<16x16xf32>
    %cst_27 = arith.constant dense<0.000000e+00> : vector<16xf32>
    %59 = vector.multi_reduction <add>, %58, %cst_27 [1] : vector<16x16xf32> to vector<16xf32>
    %60 = vector.shape_cast %59 : vector<16xf32> to vector<16x1xf32>
    %61 = tpu.reciprocal %60 {approx = true} : vector<16x1xf32> -> vector<16x1xf32>
    %62 = vector.broadcast %61 : vector<16x1xf32> to vector<16x16xf32>
    %63 = arith.mulf %58, %62 : vector<16x16xf32>
    %cst_28 = arith.constant dense<0.000000e+00> : vector<16x8xf32>
    %64 = tpu.matmul %63, %51, %cst_28 {dimension_numbers = #tpu.dot_dimension_numbers<[1], [0], [0], [1], [0, 0, 1, 1], [], []>} : vector<16x16xf32>, vector<16x8xf32>, vector<16x8xf32> -> vector<16x8xf32>
    %65 = vector.extract_strided_slice %3 {offsets = [8, 0], sizes = [8, 32], strides = [1, 1]} : vector<32x32xf32> to vector<8x32xf32>
    %cst_29 = arith.constant dense<0.000000e+00> : vector<16x32xf32>
    %66 = tpu.matmul %64, %65, %cst_29 {dimension_numbers = #tpu.dot_dimension_numbers<[1], [0], [0], [1], [0, 0, 1, 1], [], []>} : vector<16x8xf32>, vector<8x32xf32>, vector<16x32xf32> -> vector<16x32xf32>
    %67 = arith.addf %48, %66 : vector<16x32xf32>
    %68 = vector.extract_strided_slice %27 {offsets = [0, 16], sizes = [16, 8], strides = [1, 1]} : vector<16x32xf32> to vector<16x8xf32>
    %69 = vector.extract_strided_slice %28 {offsets = [0, 16], sizes = [16, 8], strides = [1, 1]} : vector<16x32xf32> to vector<16x8xf32>
    %70 = vector.extract_strided_slice %19 {offsets = [0, 16], sizes = [16, 8], strides = [1, 1]} : vector<16x32xf32> to vector<16x8xf32>
    %cst_30 = arith.constant dense<0.000000e+00> : vector<16x16xf32>
    %71 = tpu.matmul %68, %69, %cst_30 {dimension_numbers = #tpu.dot_dimension_numbers<[1], [1], [0], [0], [0, 0, 1, 0], [], []>} : vector<16x8xf32>, vector<16x8xf32>, vector<16x16xf32> -> vector<16x16xf32>
    %72 = arith.addf %71, %2 : vector<16x16xf32>
    %cst_31 = arith.constant dense<0xFF800000> : vector<16xf32>
    %73 = vector.multi_reduction <maximumf>, %72, %cst_31 [1] : vector<16x16xf32> to vector<16xf32>
    %74 = vector.shape_cast %73 : vector<16xf32> to vector<16x1xf32>
    %75 = vector.broadcast %74 : vector<16x1xf32> to vector<16x16xf32>
    %76 = arith.subf %72, %75 : vector<16x16xf32>
    %77 = math.exp %76 : vector<16x16xf32>
    %cst_32 = arith.constant dense<0.000000e+00> : vector<16xf32>
    %78 = vector.multi_reduction <add>, %77, %cst_32 [1] : vector<16x16xf32> to vector<16xf32>
    %79 = vector.shape_cast %78 : vector<16xf32> to vector<16x1xf32>
    %80 = tpu.reciprocal %79 {approx = true} : vector<16x1xf32> -> vector<16x1xf32>
    %81 = vector.broadcast %80 : vector<16x1xf32> to vector<16x16xf32>
    %82 = arith.mulf %77, %81 : vector<16x16xf32>
    %cst_33 = arith.constant dense<0.000000e+00> : vector<16x8xf32>
    %83 = tpu.matmul %82, %70, %cst_33 {dimension_numbers = #tpu.dot_dimension_numbers<[1], [0], [0], [1], [0, 0, 1, 1], [], []>} : vector<16x16xf32>, vector<16x8xf32>, vector<16x8xf32> -> vector<16x8xf32>
    %84 = vector.extract_strided_slice %3 {offsets = [16, 0], sizes = [8, 32], strides = [1, 1]} : vector<32x32xf32> to vector<8x32xf32>
    %cst_34 = arith.constant dense<0.000000e+00> : vector<16x32xf32>
    %85 = tpu.matmul %83, %84, %cst_34 {dimension_numbers = #tpu.dot_dimension_numbers<[1], [0], [0], [1], [0, 0, 1, 1], [], []>} : vector<16x8xf32>, vector<8x32xf32>, vector<16x32xf32> -> vector<16x32xf32>
    %86 = arith.addf %67, %85 : vector<16x32xf32>
    %87 = vector.extract_strided_slice %27 {offsets = [0, 24], sizes = [16, 8], strides = [1, 1]} : vector<16x32xf32> to vector<16x8xf32>
    %88 = vector.extract_strided_slice %28 {offsets = [0, 24], sizes = [16, 8], strides = [1, 1]} : vector<16x32xf32> to vector<16x8xf32>
    %89 = vector.extract_strided_slice %19 {offsets = [0, 24], sizes = [16, 8], strides = [1, 1]} : vector<16x32xf32> to vector<16x8xf32>
    %cst_35 = arith.constant dense<0.000000e+00> : vector<16x16xf32>
    %90 = tpu.matmul %87, %88, %cst_35 {dimension_numbers = #tpu.dot_dimension_numbers<[1], [1], [0], [0], [0, 0, 1, 0], [], []>} : vector<16x8xf32>, vector<16x8xf32>, vector<16x16xf32> -> vector<16x16xf32>
    %91 = arith.addf %90, %2 : vector<16x16xf32>
    %cst_36 = arith.constant dense<0xFF800000> : vector<16xf32>
    %92 = vector.multi_reduction <maximumf>, %91, %cst_36 [1] : vector<16x16xf32> to vector<16xf32>
    %93 = vector.shape_cast %92 : vector<16xf32> to vector<16x1xf32>
    %94 = vector.broadcast %93 : vector<16x1xf32> to vector<16x16xf32>
    %95 = arith.subf %91, %94 : vector<16x16xf32>
    %96 = math.exp %95 : vector<16x16xf32>
    %cst_37 = arith.constant dense<0.000000e+00> : vector<16xf32>
    %97 = vector.multi_reduction <add>, %96, %cst_37 [1] : vector<16x16xf32> to vector<16xf32>
    %98 = vector.shape_cast %97 : vector<16xf32> to vector<16x1xf32>
    %99 = tpu.reciprocal %98 {approx = true} : vector<16x1xf32> -> vector<16x1xf32>
    %100 = vector.broadcast %99 : vector<16x1xf32> to vector<16x16xf32>
    %101 = arith.mulf %96, %100 : vector<16x16xf32>
    %cst_38 = arith.constant dense<0.000000e+00> : vector<16x8xf32>
    %102 = tpu.matmul %101, %89, %cst_38 {dimension_numbers = #tpu.dot_dimension_numbers<[1], [0], [0], [1], [0, 0, 1, 1], [], []>} : vector<16x16xf32>, vector<16x8xf32>, vector<16x8xf32> -> vector<16x8xf32>
    %103 = vector.extract_strided_slice %3 {offsets = [24, 0], sizes = [8, 32], strides = [1, 1]} : vector<32x32xf32> to vector<8x32xf32>
    %cst_39 = arith.constant dense<0.000000e+00> : vector<16x32xf32>
    %104 = tpu.matmul %102, %103, %cst_39 {dimension_numbers = #tpu.dot_dimension_numbers<[1], [0], [0], [1], [0, 0, 1, 1], [], []>} : vector<16x8xf32>, vector<8x32xf32>, vector<16x32xf32> -> vector<16x32xf32>
    %105 = arith.addf %86, %104 : vector<16x32xf32>
    %cst_40 = arith.constant 1.000000e+00 : f32
    %106 = vector.broadcast %cst_40 : f32 to vector<16x32xf32>
    %107 = arith.mulf %105, %106 : vector<16x32xf32>
    %108 = arith.addf %0, %107 : vector<16x32xf32>
    %109 = arith.mulf %108, %108 : vector<16x32xf32>
    %cst_41 = arith.constant dense<0.000000e+00> : vector<16xf32>
    %110 = vector.multi_reduction <add>, %109, %cst_41 [1] : vector<16x32xf32> to vector<16xf32>
    %111 = vector.shape_cast %110 : vector<16xf32> to vector<16x1xf32>
    %cst_42 = arith.constant 3.200000e+01 : f32
    %112 = vector.broadcast %cst_42 : f32 to vector<16x1xf32>
    %113 = arith.divf %111, %112 : vector<16x1xf32>
    %cst_43 = arith.constant 9.99999997E-7 : f32
    %114 = vector.broadcast %cst_43 : f32 to vector<16x1xf32>
    %115 = arith.addf %113, %114 : vector<16x1xf32>
    %116 = math.rsqrt %115 : vector<16x1xf32>
    %117 = vector.broadcast %116 : vector<16x1xf32> to vector<16x32xf32>
    %118 = arith.mulf %108, %117 : vector<16x32xf32>
    %119 = vector.broadcast %1 : vector<1x32xf32> to vector<16x32xf32>
    %120 = arith.mulf %118, %119 : vector<16x32xf32>
    %c0_44 = arith.constant 0 : index
    %c0_45 = arith.constant 0 : index
    %121 = vector.load %arg8[%c0_44, %c0_45] : memref<32x128xf32, #tpu.memory_space<vmem>>, vector<32x128xf32>
    %cst_46 = arith.constant dense<0.000000e+00> : vector<16x128xf32>
    %122 = tpu.matmul %120, %121, %cst_46 {dimension_numbers = #tpu.dot_dimension_numbers<[1], [0], [0], [1], [0, 0, 1, 1], [], []>} : vector<16x32xf32>, vector<32x128xf32>, vector<16x128xf32> -> vector<16x128xf32>
    %123 = vector.extract_strided_slice %122 {offsets = [0, 0], sizes = [16, 64], strides = [1, 1]} : vector<16x128xf32> to vector<16x64xf32>
    %124 = vector.extract_strided_slice %122 {offsets = [0, 64], sizes = [16, 64], strides = [1, 1]} : vector<16x128xf32> to vector<16x64xf32>
    %cst_47 = arith.constant 0.000000e+00 : f32
    %125 = vector.broadcast %cst_47 : f32 to vector<16x64xf32>
    %126 = arith.subf %125, %123 : vector<16x64xf32>
    %127 = math.exp %126 : vector<16x64xf32>
    %cst_48 = arith.constant 1.000000e+00 : f32
    %128 = vector.broadcast %cst_48 : f32 to vector<16x64xf32>
    %129 = arith.addf %128, %127 : vector<16x64xf32>
    %130 = tpu.reciprocal %129 {approx = true} : vector<16x64xf32> -> vector<16x64xf32>
    %131 = arith.mulf %123, %130 : vector<16x64xf32>
    %132 = arith.mulf %131, %124 : vector<16x64xf32>
    %c0_49 = arith.constant 0 : index
    %c0_50 = arith.constant 0 : index
    %133 = vector.load %arg9[%c0_49, %c0_50] : memref<64x32xf32, #tpu.memory_space<vmem>>, vector<64x32xf32>
    %cst_51 = arith.constant dense<0.000000e+00> : vector<16x32xf32>
    %134 = tpu.matmul %132, %133, %cst_51 {dimension_numbers = #tpu.dot_dimension_numbers<[1], [0], [0], [1], [0, 0, 1, 1], [], []>} : vector<16x64xf32>, vector<64x32xf32>, vector<16x32xf32> -> vector<16x32xf32>
    %cst_52 = arith.constant 1.000000e+00 : f32
    %135 = vector.broadcast %cst_52 : f32 to vector<16x32xf32>
    %136 = arith.mulf %134, %135 : vector<16x32xf32>
    %137 = arith.addf %120, %136 : vector<16x32xf32>
    %c0_53 = arith.constant 0 : index
    %c0_54 = arith.constant 0 : index
    %138 = vector.load %arg10[%c0_53, %c0_54] : memref<16x32xf32, #tpu.memory_space<vmem>>, vector<16x32xf32>
    tpu.vector_store %arg10[%c0_53, %c0_54], %137 {strides = array<i32>} : memref<16x32xf32, #tpu.memory_space<vmem>>, vector<16x32xf32>,
    return
  }
}

</mosaic_0001>

<bundles_post_ra>
// kernel: layer_forward.1
= control target key start
LH: loop header
LB: loop body
LE: loop exit
PB: predicated region body
PF: predicated region fallthrough
CT: control target
= control target key end

     0   :  { %15 = vsyncpa [#allocation3], 0  ;;  %s1552_s0 = inlined_call_operand.hbm [shape: f32[16,32], index: 0, kind: input, shape index: {}]   ;;  %s1553_s1 = inlined_call_operand.vmem [shape: f32[1,32], index: 1, kind: input, shape index: {}]   ;;  %s1554_s2 = inlined_call_operand.hbm [shape: f32[16,64], index: 2, kind: input, shape index: {}]   ;;  %s1555_s3 = inlined_call_operand.hbm [shape: f32[16,64], index: 3, kind: input, shape index: {}]   ;;  %s1556_s4 = inlined_call_operand.hbm [shape: f32[16,16], index: 4, kind: input, shape index: {}]   ;;  %s1557_s5 = inlined_call_operand.vmem [shape: f32[64,64], index: 5, kind: input, shape index: {}]   ;;  %s1558_s6 = inlined_call_operand.vmem [shape: f32[32,96], index: 6, kind: input, shape index: {}]   ;;  %s1559_s7 = inlined_call_operand.hbm [shape: f32[32,32], index: 7, kind: input, shape index: {}]   ;;  %s1560_s8 = inlined_call_operand.hbm [shape: f32[32,128], index: 8, kind: input, shape index: {}]   ;;  %s1561_s9 = inlined_call_operand.vmem [shape: f32[64,32], index: 9, kind: input, shape index: {}]   ;;  %s1562_s10 = inlined_call_operand.hbm [shape: f32[16,32], index: 10, kind: output, shape index: {}]  }
   0x1   :  { %16 = vsyncpa [#allocation6], 0 }
   0x2   :  { %17 = vsyncpa [#allocation9], 0 }
   0x3   :  { %18 = vsyncpa [#allocation12], 0 }
   0x4   :  { %19 = vsyncpa [#allocation4], 0  ;;  %s39_s15 = sshll.u32 %s1554_s2, 4  ;;  %s1238_s16 = smov [#allocation5]   ;;  %s40_s15 = int_to_ptr.hbm [resolvable:$true] %s39_s15 }
   0x5   :  { %s41_s17 = sshll.u32 %s1238_s16, 4  ;;  %s65_s20 = sshll.u32 %s1556_s4, 4  ;;  %s42_s17 = int_to_ptr.vmem [resolvable:$true] %s41_s17  ;;  %s66_s20 = int_to_ptr.hbm [resolvable:$true] %s65_s20 }
   0x6   :  { %s1239_s21 = smov 128   ;;  %s1240_s22 = smov 8  }
   0x7   :  { %47 = dma.hbm_to_vmem [thread:$0]  %s40_s15, 256, %s42_s17, [#allocation6], %s1239_s21, %s1239_s21, %s1240_s22  }
   0x8   :  { %s1241_s23 = smov [#allocation8]   ;;  %s24_s2 = sshll.u32 %s1552_s0, 4  ;;  %s25_s2 = int_to_ptr.hbm [resolvable:$true] %s24_s2 }
   0x9   :  { %s67_s24 = sshll.u32 %s1241_s23, 4  ;;  %s52_s28 = sshll.u32 %s1555_s3, 4  ;;  %s68_s24 = int_to_ptr.vmem [resolvable:$true] %s67_s24  ;;  %s53_s28 = int_to_ptr.hbm [resolvable:$true] %s52_s28 }
   0xa   :  { %73 = dma.hbm_to_vmem [thread:$0]  %s66_s20, 256, %s68_s24, [#allocation9], %s1239_s21, %s1239_s21, %s1240_s22  }
   0xb   :  { %s1242_s29 = smov [#allocation2]   ;;  %s1243_s11 = smov [#allocation7]  }
   0xc   :  { %s26_s30 = sshll.u32 %s1242_s29, 4  ;;  %s54_s0 = sshll.u32 %s1243_s11, 4  ;;  %s27_s30 = int_to_ptr.vmem [resolvable:$true] %s26_s30  ;;  %s55_s0 = int_to_ptr.vmem [resolvable:$true] %s54_s0 }
   0xd   :  { %32 = dma.hbm_to_vmem [thread:$0]  %s25_s2, 256, %s27_s30, [#allocation3], %s1239_s21, %s1239_s21, %s1240_s22  }
   0xe   :  { %s82_s14 = sshll.u32 %s1559_s7, 4  ;;  %s95_s16 = sshll.u32 %s1560_s8, 4  ;;  %s83_s14 = int_to_ptr.hbm [resolvable:$true] %s82_s14  ;;  %s96_s16 = int_to_ptr.hbm [resolvable:$true] %s95_s16 }
   0xf   :  { %60 = dma.hbm_to_vmem [thread:$0]  %s53_s28, 256, %s55_s0, [#allocation6], %s1239_s21, %s1239_s21, %s1240_s22  }
  0x10   :  { %s1244_s17 = smov [#allocation10]   ;;  %s1245_s19 = smov [#allocation11]  }
  0x11   :  { %s84_s18 = sshll.u32 %s1244_s17, 4  ;;  %s97_s7 = sshll.u32 %s1245_s19, 4  ;;  %s85_s18 = int_to_ptr.vmem [resolvable:$true] %s84_s18  ;;  %s98_s7 = int_to_ptr.vmem [resolvable:$true] %s97_s7 }
  0x12   :  { %90 = dma.hbm_to_vmem [thread:$0]  %s83_s14, 512, %s85_s18, [#allocation9], %s1239_s21, %s1239_s21, %s1240_s22  }
  0x13   :  { %103 = dma.hbm_to_vmem [thread:$0]  %s96_s16, 512, %s98_s7, [#allocation12], %s1239_s21, %s1239_s21, %s1240_s22  }
  0x14   :  { %1228 = dma.done.wait [#allocation3], 256  }
  0x15   :  { %1229 = vsyncadd [#allocation3], 4294967040 }
  0x16   :  { %1230 = dma.done.wait [#allocation6], 512  }
  0x17   :  { %1231 = vsyncadd [#allocation6], 4294966784 }
  0x18   :  { %1232 = dma.done.wait [#allocation9], 768  }
  0x19   :  { %1233 = vsyncadd [#allocation9], 4294966528 }
  0x1a   :  { %1234 = dma.done.wait [#allocation12], 512  }
  0x1b   :  { %1235 = vsyncadd [#allocation12], 4294966784  ;;  %v1350_v0 = vld [vmem:[#allocation2] sm:$0xff]  ;;  %vm141_vm0 = vcmask 261120   ;;  %v1354_v2 = vld [vmem:[#allocation2 + $0x8] sm:$0xff]  ;;  %v1246_v6 = vmov 32.0  }
  0x1c   :  { %v139_v1 = vmul.f32 %v1350_v0, %v1350_v0  ;;  %v140_v4 = vmul.f32 %v1354_v2, %v1354_v2  ;;  %1010 = vrcp.f32 %v1246_v6  ;;  %v189_v10 = vld [vmem:[%s1558_s6 + $0x18] sm:$0xff]  ;;  %v188_v11 = vld [vmem:[%s1558_s6 + $0x10] sm:$0xff]  ;;  %v187_v13 = vld [vmem:[%s1558_s6 + $0x8] sm:$0xff]  ;;  %vm231_vm8 = vcmask 523264   ;;  %s1247_s8 = smov 96   ;;  %s1249_s20 = smov 88  }
  0x1d   :  { %208 = vmatpush.msra.mxu0 %v189_v10  ;;  %v186_v14 = vld [vmem:[%s1558_s6] sm:$0xff]  ;;  %v230_v20 = vld [vmem:[%s1557_s5 + $0x38] sm:$0xff]  ;;  %v229_v21 = vld [vmem:[%s1557_s5 + $0x30] sm:$0xff]  ;;  %s1250_s23 = smov 120   ;;  %s1251_s24 = smov 80   ;;  %vm273_vm9 = vcmask 64512  }
  0x1e   :  { %v142_v3 = vsel %vm141_vm0, %v139_v1, 0.0  ;;  %v145_v5 = vsel %vm141_vm0, %v140_v4, 0.0  ;;  %246 = vmatpush.msra.mxu1 %v230_v20  ;;  %v228_v22 = vld [vmem:[%s1557_s5 + $0x28] sm:$0xff]  ;;  %v227_v23 = vld [vmem:[%s1557_s5 + $0x20] sm:$0xff]  ;;  %v226_v26 = vld [vmem:[%s1557_s5 + $0x18] sm:$0xff]  ;;  %s1252_s25 = smov 112  }
  0x1f   :  { %143 = vadd.xlane.f32.xlu0 %v142_v3  ;;  %209 = vmatpush.msra.mxu0 %v188_v11  ;;  %v225_v29 = vld [vmem:[%s1557_s5 + $0x10] sm:$0xff]  ;;  %v224_v31 = vld [vmem:[%s1557_s5 + $0x8] sm:$0xff]  ;;  %v1400_v38 = vld [vmem:[%s1553_s1] ss:$0 sm:$0xff]  ;;  %vm305_vm10 = vcmask 130048   ;;  %s1253_s26 = smov 72  }
  0x20   :  { %247 = vmatpush.msra.mxu1 %v229_v21  ;;  %v223_v49 = vld [vmem:[%s1557_s5] sm:$0xff]  ;;  %v220_v53 = vld [vmem:[#allocation5 + $0x8] sm:$0xff]  ;;  %v262_v54 = vld [vmem:[#allocation7 + $0x8] sm:$0xff]  ;;  %s1248_s5 = smov 64   ;;  %s1254_s2 = smov 104  }
  0x21   :  { %210 = vmatpush.msra.mxu0 %v187_v13  ;;  %v261_v59 = vld [vmem:[#allocation7] sm:$0xff]  ;;  %v219_v60 = vld [vmem:[#allocation5] sm:$0xff]  ;;  %s1255_s4 = smov 56   ;;  %s1256_s27 = smov 40  }
  0x22   :  { %v1011_v7 = vpop.eup %1010  ;;  %248 = vmatpush.msra.mxu1 %v228_v22  ;;  %s1257_s28 = smov 48  }
  0x23   :  { %v149_v8 = vmul.f32 32.0, %v1011_v7  ;;  %211 = vmatpush.msra.mxu0 %v186_v14  ;;  %vm153_vm1 = vweird.f32 %v1011_v7 }
  0x24   :  { %249 = vmatpush.msra.mxu1 %v227_v23 }
  0x25   :  { %v150_v9 = vsub.f32 1.0, %v149_v8  ;;  %v1431_v8 = vld [vmem:[#allocation8] sm:$0xff] }
  0x26   :  { %250 = vmatpush.msra.mxu1 %v226_v26 }
  0x27   :  { %146 = vadd.xlane.f32.xlu0 %v145_v5  ;;  %v151_v12 = vmul.f32 %v1011_v7, %v150_v9 }
  0x28   :  { %251 = vmatpush.msra.mxu1 %v225_v29 }
  0x29   :  { %v152_v15 = vadd.f32 %v1011_v7, %v151_v12  ;;  %v1435_v12 = vld [vmem:[#allocation8 + $0x8] sm:$0xff] }
  0x2a   :  { %252 = vmatpush.msra.mxu1 %v224_v31 }
  0x2b   :  { %v1372_v16 = vsel %vm153_vm1, %v1011_v7, %v152_v15 }
  0x2c   :  { %253 = vmatpush.msra.mxu1 %v223_v49 }
  0x92   :  { %v144_v17 = vpop.xlane.xlu0 %143 }
  0x93   :  { %v155_v18 = vmul.f32 %v1372_v16, %v144_v17 }
  0x95   :  { %v157_v19 = vadd.f32 1e-06, %v155_v18 }
  0x97   :  { %1012 = vrsqrt.f32 %v157_v19  ;;  %vm165_vm3 = vweird.f32 %v157_v19 }
  0x9a   :  { %v147_v24 = vpop.xlane.xlu0 %146 }
  0x9b   :  { %v156_v25 = vmul.f32 %v1372_v16, %v147_v24 }
  0x9d   :  { %v1013_v27 = vpop.eup %1012  ;;  %v158_v28 = vadd.f32 1e-06, %v156_v25 }
  0x9e   :  { %v160_v30 = vmul.f32 %v1013_v27, %v157_v19  ;;  %vm166_vm2 = vweird.f32 %v1013_v27 }
  0x9f   :  { %1014 = vrsqrt.f32 %v158_v28  ;;  %vm167_vm4 = vmor %vm165_vm3, %vm166_vm2  ;;  %vm175_vm6 = vweird.f32 %v158_v28 }
  0xa0   :  { %v161_v32 = vmul.f32 %v1013_v27, %v160_v30 }
  0xa2   :  { %v162_v33 = vmul.f32 0.5, %v161_v32 }
  0xa4   :  { %v163_v34 = vsub.f32 1.5, %v162_v33 }
  0xa5   :  { %v1015_v35 = vpop.eup %1014 }
  0xa6   :  { %v164_v36 = vmul.f32 %v1013_v27, %v163_v34  ;;  %v170_v37 = vmul.f32 %v1015_v35, %v158_v28  ;;  %vm176_vm5 = vweird.f32 %v1015_v35 }
  0xa7   :  { %vm177_vm7 = vmor %vm175_vm6, %vm176_vm5 }
  0xa8   :  { %v171_v39 = vmul.f32 %v1015_v35, %v170_v37  ;;  %v168_v40 = vsel %vm167_vm4, %v1013_v27, %v164_v36  ;;  %v135_v27 = vld [vmem:[#allocation10] sm:$0xff] }
  0xa9   :  { %v179_v41 = vmul.f32 %v168_v40, %v1350_v0  ;;  %509 = vmatpush.msrb.mxu1 %v135_v27 }
  0xaa   :  { %v172_v42 = vmul.f32 0.5, %v171_v39 }
  0xab   :  { %v184_v43 = vmul.f32 %v1400_v38, %v179_v41 }
  0xac   :  { %v173_v44 = vsub.f32 1.5, %v172_v42 }
  0xad   :  { %927 = vmatmul.msk.f32.vlgmr.msra.gmra.mxu0 %vm141_vm0, %v184_v43 }
  0xae   :  { %v174_v45 = vmul.f32 %v1015_v35, %v173_v44 }
  0xb0   :  { %v178_v46 = vsel %vm177_vm7, %v1015_v35, %v174_v45 }
  0xb1   :  { %v180_v47 = vmul.f32 %v178_v46, %v1354_v2 }
  0xb3   :  { %v185_v48 = vmul.f32 %v1400_v38, %v180_v47 }
  0xb5   :  { %928 = vmatmul.msk.f32.gmra.mxu0 %vm141_vm0, %v185_v48 }
 0x12a   :  { %v213_v50 = vpop.f32.mrf.mxu0 }
 0x12b   :  { %929 = vmatmul.msk.f32.vlgmr.msra.gmra.mxu1 %vm231_vm8, %v213_v50  ;;  %v221_v62 = vmul.f32 %v219_v60, %v213_v50 }
 0x132   :  { %v216_v51 = vpop.f32.mrf.mxu0 }
 0x133   :  { %930 = vmatmul.msk.f32.gmra.mxu1 %vm231_vm8, %v216_v51  ;;  %v222_v56 = vmul.f32 %v220_v53, %v216_v51  ;;  %v1416_v1 = vpack.i.bf16 %v213_v50, %v216_v51 }
 0x1a8   :  { %v255_v52 = vpop.f32.mrf.mxu1 }
 0x1a9   :  { %v263_v61 = vmul.f32 %v261_v59, %v255_v52 }
 0x1ab   :  { %v265_v63 = vadd.f32 %v263_v61, %v221_v62 }
 0x1b0   :  { %v258_v55 = vpop.f32.mrf.mxu1 }
 0x1b1   :  { %v264_v57 = vmul.f32 %v262_v54, %v258_v55 }
 0x1b3   :  { %v1413_v58 = vadd.f32 %v264_v57, %v222_v56 }
 0x1b5   :  { %271 = vrot.lane.b32.xlu1 %v1413_v58, %s1247_s8 }
 0x1bd   :  { %269 = vrot.lane.b32.xlu1 %v265_v63, %s1247_s8 }
 0x1c5   :  { %990 = vrot.lane.b32.xlu1 %v1416_v1, %s1248_s5 }
 0x1cd   :  { %367 = vrot.lane.b32.xlu1 %v265_v63, %s1249_s20 }
 0x1d5   :  { %365 = vrot.lane.b32.xlu1 %v1413_v58, %s1250_s23 }
 0x1dd   :  { %523 = vrot.lane.b32.xlu1 %v1413_v58, %s1251_s24 }
 0x1e5   :  { %517 = vrot.lane.b32.xlu1 %v265_v63, %s1252_s25 }
 0x1ed   :  { %519 = vrot.lane.b32.xlu1 %v1413_v58, %s1252_s25 }
 0x227   :  { %v272_v3 = vpop.permute.xlu1 %271 }
 0x228   :  { %931 = vmatpush.xpose.msk.msra.mxu2 %vm273_vm9, %v272_v3 }
 0x22f   :  { %v270_v4 = vpop.permute.xlu1 %269 }
 0x230   :  { %932 = vmatpush.xpose.msk.msra.mxu2 %vm273_vm9, %v270_v4 }
 0x233   :  { %933 = vmatmul.msk.f32.vlgmr.msra.gmra.mxu2 %vm273_vm9, %v265_v63 }
 0x237   :  { %v991_v5 = vpop.permute.xlu1 %990 }
 0x238   :  { %v992_v6 = vunpack.i.l.bf16 %v991_v5  ;;  %v993_v7 = vunpack.i.h.bf16 %v991_v5 }
 0x23a   :  { %354 = vmatpush.msra.mxu3 %v992_v6 }
 0x23b   :  { %934 = vmatmul.msk.f32.gmra.mxu2 %vm273_vm9, %v1413_v58 }
 0x23c   :  { %355 = vmatpush.msra.mxu3 %v993_v7 }
 0x23f   :  { %v368_v30 = vpop.permute.xlu1 %367 }
 0x247   :  { %v366_v36 = vpop.permute.xlu1 %365 }
 0x24f   :  { %v524_v40 = vpop.permute.xlu1 %523 }
 0x257   :  { %v518_v46 = vpop.permute.xlu1 %517 }
 0x25f   :  { %v520_v51 = vpop.permute.xlu1 %519 }
 0x2b6   :  { %v299_v9 = vpop.f32.mrf.mxu2 }
 0x2b7   :  { %v300_v10 = vadd.f32 %v299_v9, %v1431_v8 }
 0x2b9   :  { %v306_v11 = vsel %vm305_vm10, %v300_v10, -inf }
 0x2ba   :  { %307 = vmax.xlane.f32.xlu2 %v306_v11 }
 0x2be   :  { %v302_v13 = vpop.f32.mrf.mxu2 }
 0x2bf   :  { %v303_v14 = vadd.f32 %v302_v13, %v1435_v12 }
 0x2c1   :  { %v309_v15 = vsel %vm305_vm10, %v303_v14, -inf }
 0x2c2   :  { %310 = vmax.xlane.f32.xlu2 %v309_v15 }
 0x32d   :  { %v308_v17 = vpop.xlane.xlu2 %307 }
 0x32e   :  { %v312_v18 = vsub.f32 %v300_v10, %v308_v17 }
 0x330   :  { %v314_v19 = vmul.f32 1.442695, %v312_v18 }
 0x332   :  { %1016 = vpow2.f32 %v314_v19 }
 0x335   :  { %v311_v20 = vpop.xlane.xlu2 %310 }
 0x336   :  { %v313_v21 = vsub.f32 %v303_v14, %v311_v20 }
 0x338   :  { %v1017_v22 = vpop.eup %1016  ;;  %v316_v23 = vmul.f32 1.442695, %v313_v21 }
 0x339   :  { %v318_v24 = vsel %vm305_vm10, %v1017_v22, 0.0 }
 0x33a   :  { %1018 = vpow2.f32 %v316_v23  ;;  %319 = vadd.xlane.f32.xlu0 %v318_v24 }
 0x340   :  { %v1019_v25 = vpop.eup %1018 }
 0x341   :  { %v321_v26 = vsel %vm305_vm10, %v1019_v25, 0.0 }
 0x342   :  { %322 = vadd.xlane.f32.xlu2 %v321_v26 }
 0x34e   :  { %369 = vrot.lane.b32.xlu0 %v1413_v58, %s1249_s20 }
 0x356   :  { %521 = vrot.lane.b32.xlu0 %v265_v63, %s1251_s24 }
 0x35a   :  { %363 = vrot.lane.b32.xlu2 %v265_v63, %s1250_s23  ;;  %s911_s23 = sshll.u32 %s1562_s10, 4  ;;  %s912_s23 = int_to_ptr.hbm [resolvable:$true] %s911_s23 }
 0x35e   :  { %648 = vrot.lane.b32.xlu0 %v265_v63, %s1253_s26 }
 0x362   :  { %650 = vrot.lane.b32.xlu2 %v1413_v58, %s1253_s26 }
 0x366   :  { %646 = vrot.lane.b32.xlu0 %v1413_v58, %s1254_s2 }
 0x36a   :  { %644 = vrot.lane.b32.xlu2 %v265_v63, %s1254_s2 }
 0x3ad   :  { %v320_v28 = vpop.xlane.xlu0 %319 }
 0x3ae   :  { %1020 = vrcp.f32 %v320_v28 }
 0x3b4   :  { %v1021_v29 = vpop.eup %1020 }
 0x3b5   :  { %v323_v31 = vpop.xlane.xlu2 %322  ;;  %v326_v32 = vmul.f32 %v1021_v29, %v1017_v22 }
 0x3b6   :  { %1022 = vrcp.f32 %v323_v31 }
 0x3b7   :  { %935 = vmatmul.msk.f32.vlgmr.msra.gmra.mxu3 %vm305_vm10, %v326_v32 }
 0x3bc   :  { %v1023_v33 = vpop.eup %1022 }
 0x3bd   :  { %v364_v34 = vpop.permute.xlu2 %363  ;;  %v327_v35 = vmul.f32 %v1023_v33, %v1019_v25 }
 0x3bf   :  { %936 = vmatmul.msk.f32.gmra.mxu3 %vm305_vm10, %v327_v35 }
 0x3c0   :  { %v370_v37 = vpop.permute.xlu0 %369 }
 0x3c1   :  { %937 = vmatpush.xpose.msk.msrb.mxu3 %vm273_vm9, %v370_v37 }
 0x3c5   :  { %v651_v39 = vpop.permute.xlu2 %650  ;;  %938 = vmatpush.xpose.msk.msrb.mxu3 %vm273_vm9, %v368_v30 }
 0x3c6   :  { %955 = vmatpush.xpose.msk.msra.mxu1 %vm273_vm9, %v651_v39 }
 0x3c8   :  { %v522_v41 = vpop.permute.xlu0 %521  ;;  %939 = vmatmul.msk.f32.vlgmr.msrb.gmra.mxu3 %vm273_vm9, %v364_v34 }
 0x3c9   :  { %967 = vmatpush.msra.mxu3 %v135_v27 }
 0x3cb   :  { %947 = vmatpush.xpose.msk.msrb.mxu3 %vm273_vm9, %v524_v40 }
 0x3cd   :  { %v645_v44 = vpop.permute.xlu2 %644 }
 0x3cf   :  { %948 = vmatpush.xpose.msk.msrb.mxu3 %vm273_vm9, %v522_v41 }
 0x3d0   :  { %v649_v42 = vpop.permute.xlu0 %648  ;;  %940 = vmatmul.msk.f32.gmra.mxu3 %vm273_vm9, %v366_v36 }
 0x3d1   :  { %956 = vmatpush.xpose.msk.msra.mxu1 %vm273_vm9, %v649_v42 }
 0x3d8   :  { %v647_v47 = vpop.permute.xlu0 %646 }
 0x43a   :  { %v357_v43 = vpop.f32.mrf.mxu3 }
 0x43b   :  { %945 = vmatmul.msk.f32.vlgmr.msrb.gmra.mxu1 %vm273_vm9, %v357_v43 }
 0x442   :  { %v360_v45 = vpop.f32.mrf.mxu3 }
 0x443   :  { %946 = vmatmul.msk.f32.vlgmr.msra.gmra.mxu3 %vm273_vm9, %v360_v45  ;;  %957 = vmatmul.msk.f32.vlgmr.msra.gmra.mxu1 %vm273_vm9, %v645_v44 }
 0x44b   :  { %v396_v48 = vpop.f32.mrf.mxu3  ;;  %949 = vmatmul.msk.f32.vlgmr.msrb.gmra.mxu3 %vm273_vm9, %v518_v46  ;;  %958 = vmatmul.msk.f32.gmra.mxu1 %vm273_vm9, %v647_v47 }
 0x44c   :  { %v397_v49 = vadd.f32 %v396_v48, %v1431_v8 }
 0x44e   :  { %v402_v50 = vsel %vm305_vm10, %v397_v49, -inf }
 0x44f   :  { %403 = vmax.xlane.f32.xlu1 %v402_v50 }
 0x453   :  { %v399_v52 = vpop.f32.mrf.mxu3  ;;  %950 = vmatmul.msk.f32.gmra.mxu3 %vm273_vm9, %v520_v51 }
 0x454   :  { %v400_v53 = vadd.f32 %v399_v52, %v1435_v12 }
 0x456   :  { %v405_v54 = vsel %vm305_vm10, %v400_v53, -inf }
 0x457   :  { %406 = vmax.xlane.f32.xlu2 %v405_v54 }
 0x4b8   :  { %v1467_v55 = vpop.f32.mrf.mxu1 }
 0x4c0   :  { %v677_v56 = vpop.f32.mrf.mxu1 }
 0x4c1   :  { %v678_v57 = vadd.f32 %v677_v56, %v1431_v8 }
 0x4c2   :  { %v404_v58 = vpop.xlane.xlu1 %403 }
 0x4c3   :  { %v408_v59 = vsub.f32 %v397_v49, %v404_v58  ;;  %v683_v60 = vsel %vm305_vm10, %v678_v57, -inf }
 0x4c4   :  { %684 = vmax.xlane.f32.xlu2 %v683_v60 }
 0x4c5   :  { %v410_v61 = vmul.f32 1.442695, %v408_v59 }
 0x4c6   :  { %v1471_v62 = vpop.f32.mrf.mxu3 }
 0x4c7   :  { %1024 = vpow2.f32 %v410_v61 }
 0x4c8   :  { %v680_v10 = vpop.f32.mrf.mxu1 }
 0x4c9   :  { %v681_v13 = vadd.f32 %v680_v10, %v1435_v12 }
 0x4ca   :  { %v407_v3 = vpop.xlane.xlu2 %406 }
 0x4cb   :  { %v409_v7 = vsub.f32 %v400_v53, %v407_v3  ;;  %v686_v17 = vsel %vm305_vm10, %v681_v13, -inf }
 0x4cd   :  { %v1473_v63 = vpop.eup %1024  ;;  %v412_v11 = vmul.f32 1.442695, %v409_v7 }
 0x4ce   :  { %v550_v4 = vpop.f32.mrf.mxu3  ;;  %v414_v5 = vsel %vm305_vm10, %v1473_v63, 0.0 }
 0x4cf   :  { %v551_v6 = vadd.f32 %v550_v4, %v1431_v8  ;;  %415 = vadd.xlane.f32.xlu2 %v414_v5  ;;  %1026 = vpow2.f32 %v412_v11  ;;  %v138_v11 = vld [vmem:[#allocation10 + $0x18] sm:$0xff] }
 0x4d1   :  { %v556_v9 = vsel %vm305_vm10, %v551_v6, -inf }
 0x4d2   :  { %557 = vmax.xlane.f32.xlu0 %v556_v9 }
 0x4d5   :  { %v1027_v8 = vpop.eup %1026 }
 0x4d6   :  { %v553_v14 = vpop.f32.mrf.mxu3  ;;  %v417_v19 = vsel %vm305_vm10, %v1027_v8, 0.0 }
 0x4d7   :  { %v554_v15 = vadd.f32 %v553_v14, %v1435_v12 }
 0x4d9   :  { %v559_v18 = vsel %vm305_vm10, %v554_v15, -inf }
 0x4da   :  { %687 = vmax.xlane.f32.xlu0 %v686_v17  ;;  %560 = vmax.xlane.f32.xlu1 %v559_v18 }
 0x4e2   :  { %418 = vadd.xlane.f32.xlu0 %v417_v19 }
 0x4f3   :  { %995 = vrot.lane.b32.xlu1 %v1416_v1, %s1255_s4 }
 0x4fb   :  { %1005 = vrot.lane.b32.xlu1 %v1416_v1, %s1256_s27 }
 0x537   :  { %v685_v20 = vpop.xlane.xlu2 %684 }
 0x538   :  { %v689_v21 = vsub.f32 %v678_v57, %v685_v20 }
 0x53a   :  { %v691_v12 = vmul.f32 1.442695, %v689_v21 }
 0x53c   :  { %1028 = vpow2.f32 %v691_v12 }
 0x542   :  { %v1029_v22 = vpop.eup %1028  ;;  %v416_v37 = vpop.xlane.xlu2 %415 }
 0x543   :  { %v695_v23 = vsel %vm305_vm10, %v1029_v22, 0.0 }
 0x544   :  { %696 = vadd.xlane.f32.xlu0 %v695_v23 }
 0x545   :  { %v558_v24 = vpop.xlane.xlu0 %557 }
 0x546   :  { %v562_v25 = vsub.f32 %v551_v6, %v558_v24 }
 0x548   :  { %v564_v26 = vmul.f32 1.442695, %v562_v25 }
 0x54a   :  { %1030 = vpow2.f32 %v564_v26 }
 0x54d   :  { %v561_v27 = vpop.xlane.xlu1 %560  ;;  %v688_v28 = vpop.xlane.xlu0 %687 }
 0x54e   :  { %v563_v29 = vsub.f32 %v554_v15, %v561_v27  ;;  %v690_v32 = vsub.f32 %v681_v13, %v688_v28  ;;  %v137_v13 = vld [vmem:[#allocation10 + $0x10] sm:$0xff] }
 0x550   :  { %v1031_v30 = vpop.eup %1030  ;;  %v566_v31 = vmul.f32 1.442695, %v563_v29  ;;  %v693_v34 = vmul.f32 1.442695, %v690_v32 }
 0x551   :  { %v568_v33 = vsel %vm305_vm10, %v1031_v30, 0.0 }
 0x552   :  { %569 = vadd.xlane.f32.xlu2 %v568_v33  ;;  %1032 = vpow2.f32 %v566_v31 }
 0x553   :  { %1034 = vpow2.f32 %v693_v34  ;;  %v812_v34 = vld [vmem:[#allocation11 + $0x18] sm:$0xff] }
 0x554   :  { %1036 = vrcp.f32 %v416_v37 }
 0x555   :  { %v419_v41 = vpop.xlane.xlu0 %418 }
 0x556   :  { %1038 = vrcp.f32 %v419_v41 }
 0x558   :  { %v1033_v35 = vpop.eup %1032 }
 0x559   :  { %v571_v36 = vsel %vm305_vm10, %v1033_v35, 0.0  ;;  %v1035_v39 = vpop.eup %1034 }
 0x55a   :  { %572 = vadd.xlane.f32.xlu0 %v571_v36  ;;  %v698_v40 = vsel %vm305_vm10, %v1035_v39, 0.0  ;;  %v1037_v43 = vpop.eup %1036  ;;  %v809_v36 = vld [vmem:[#allocation11] sm:$0xff] }
 0x55b   :  { %v422_v46 = vmul.f32 %v1037_v43, %v1473_v63 }
 0x55c   :  { %v1039_v48 = vpop.eup %1038 }
 0x55d   :  { %v423_v51 = vmul.f32 %v1039_v48, %v1027_v8 }
 0x562   :  { %699 = vadd.xlane.f32.xlu0 %v698_v40 }
 0x565   :  { %v996_v42 = vpop.permute.xlu1 %995 }
 0x566   :  { %v997_v44 = vunpack.i.l.bf16 %v996_v42  ;;  %v998_v45 = vunpack.i.h.bf16 %v996_v42 }
 0x568   :  { %450 = vmatpush.msrb.mxu0 %v997_v44 }
 0x56a   :  { %1000 = vrot.lane.b32.xlu2 %v1416_v1, %s1257_s28  ;;  %451 = vmatpush.msrb.mxu0 %v998_v45  ;;  %v136_v1 = vld [vmem:[#allocation10 + $0x8] sm:$0xff] }
 0x56b   :  { %941 = vmatmul.msk.f32.vlgmr.msrb.gmra.mxu0 %vm305_vm10, %v422_v46  ;;  %480 = vmatpush.msrb.mxu2 %v136_v1 }
 0x56d   :  { %v1006_v47 = vpop.permute.xlu1 %1005  ;;  %634 = vmatpush.msra.mxu2 %v137_v13 }
 0x56e   :  { %v1007_v49 = vunpack.i.l.bf16 %v1006_v47  ;;  %v1008_v50 = vunpack.i.h.bf16 %v1006_v47 }
 0x570   :  { %731 = vmatpush.msra.mxu3 %v1007_v49 }
 0x572   :  { %732 = vmatpush.msra.mxu3 %v1008_v50 }
 0x573   :  { %942 = vmatmul.msk.f32.gmra.mxu0 %vm305_vm10, %v423_v51 }
 0x5b7   :  { %v697_v52 = vpop.xlane.xlu0 %696 }
 0x5b8   :  { %1040 = vrcp.f32 %v697_v52 }
 0x5be   :  { %v1041_v53 = vpop.eup %1040 }
 0x5bf   :  { %v703_v54 = vmul.f32 %v1041_v53, %v1029_v22 }
 0x5c1   :  { %959 = vmatmul.msk.f32.vlgmr.msra.gmra.mxu3 %vm305_vm10, %v703_v54 }
 0x5c5   :  { %v570_v56 = vpop.xlane.xlu2 %569 }
 0x5c6   :  { %1042 = vrcp.f32 %v570_v56 }
 0x5cc   :  { %v1043_v58 = vpop.eup %1042 }
 0x5cd   :  { %v1001_v57 = vpop.permute.xlu2 %1000  ;;  %v573_v60 = vpop.xlane.xlu0 %572  ;;  %v576_v63 = vmul.f32 %v1043_v58, %v1031_v30 }
 0x5ce   :  { %v1002_v59 = vunpack.i.l.bf16 %v1001_v57  ;;  %v1003_v61 = vunpack.i.h.bf16 %v1001_v57  ;;  %1044 = vrcp.f32 %v573_v60  ;;  %v871_v60 = vld [vmem:[%s1561_s9 + $0x38] sm:$0xff] }
 0x5cf   :  { %886 = vmatpush.msrb.mxu1 %v871_v60 }
 0x5d0   :  { %604 = vmatpush.msra.mxu0 %v1002_v59 }
 0x5d2   :  { %605 = vmatpush.msra.mxu0 %v1003_v61  ;;  %v870_v61 = vld [vmem:[%s1561_s9 + $0x30] sm:$0xff] }
 0x5d3   :  { %951 = vmatmul.msk.f32.vlgmr.msra.gmra.mxu0 %vm305_vm10, %v576_v63  ;;  %v869_v63 = vld [vmem:[%s1561_s9 + $0x28] sm:$0xff]  ;;  %887 = vmatpush.msrb.mxu1 %v870_v61 }
 0x5d4   :  { %v1045_v3 = vpop.eup %1044  ;;  %761 = vmatpush.msrb.mxu0 %v138_v11 }
 0x5d5   :  { %v700_v4 = vpop.xlane.xlu0 %699  ;;  %v577_v5 = vmul.f32 %v1045_v3, %v1033_v35  ;;  %v811_v35 = vld [vmem:[#allocation11 + $0x10] sm:$0xff]  ;;  %888 = vmatpush.msrb.mxu1 %v869_v63  ;;  %v867_v3 = vld [vmem:[%s1561_s9 + $0x18] sm:$0xff] }
 0x5d6   :  { %1046 = vrcp.f32 %v700_v4  ;;  %v866_v4 = vld [vmem:[%s1561_s9 + $0x10] sm:$0xff] }
 0x5db   :  { %952 = vmatmul.msk.f32.gmra.mxu0 %vm305_vm10, %v577_v5  ;;  %v865_v5 = vld [vmem:[%s1561_s9 + $0x8] sm:$0xff] }
 0x5dc   :  { %v1047_v6 = vpop.eup %1046 }
 0x5dd   :  { %v704_v7 = vmul.f32 %v1047_v6, %v1035_v39 }
 0x5df   :  { %960 = vmatmul.msk.f32.gmra.mxu3 %vm305_vm10, %v704_v7 }
 0x5e8   :  { %v453_v9 = vpop.f32.mrf.mxu0 }
 0x5e9   :  { %943 = vmatmul.msk.f32.vlgmr.msrb.gmra.mxu2 %vm273_vm9, %v453_v9  ;;  %v864_v9 = vld [vmem:[%s1561_s9] sm:$0xff] }
 0x5ea   :  { %831 = vmatpush.msrb.mxu2 %v812_v34 }
 0x5ec   :  { %832 = vmatpush.msrb.mxu2 %v811_v35 }
 0x5f0   :  { %v456_v10 = vpop.f32.mrf.mxu0 }
 0x5f1   :  { %944 = vmatmul.msk.f32.gmra.mxu2 %vm273_vm9, %v456_v10 }
 0x644   :  { %v734_v14 = vpop.f32.mrf.mxu3 }
 0x645   :  { %961 = vmatmul.msk.f32.vlgmr.msrb.gmra.mxu0 %vm273_vm9, %v734_v14 }
 0x650   :  { %v607_v15 = vpop.f32.mrf.mxu0 }
 0x651   :  { %953 = vmatmul.msk.f32.vlgmr.msra.gmra.mxu2 %vm273_vm9, %v607_v15 }
 0x658   :  { %v610_v17 = vpop.f32.mrf.mxu0 }
 0x659   :  { %954 = vmatmul.msk.f32.gmra.mxu2 %vm273_vm9, %v610_v17 }
 0x662   :  { %v737_v18 = vpop.f32.mrf.mxu3 }
 0x663   :  { %962 = vmatmul.msk.f32.gmra.mxu0 %vm273_vm9, %v737_v18 }
 0x66c   :  { %v482_v8 = vpop.f32.mrf.mxu2 }
 0x66d   :  { %v512_v20 = vadd.f32 %v1467_v55, %v482_v8 }
 0x674   :  { %v485_v19 = vpop.f32.mrf.mxu2 }
 0x675   :  { %v515_v28 = vadd.f32 %v1471_v62, %v485_v19 }
 0x6c2   :  { %v763_v22 = vpop.f32.mrf.mxu0 }
 0x6d4   :  { %v636_v21 = vpop.f32.mrf.mxu2 }
 0x6d5   :  { %v642_v12 = vadd.f32 %v636_v21, %v512_v20 }
 0x6d7   :  { %v769_v23 = vadd.f32 %v763_v22, %v642_v12 }
 0x6d9   :  { %v771_v24 = vadd.f32 %v769_v23, %v1350_v0  ;;  %v810_v0 = vld [vmem:[#allocation11 + $0x8] sm:$0xff] }
 0x6da   :  { %833 = vmatpush.msrb.mxu2 %v810_v0 }
 0x6db   :  { %v773_v25 = vmul.f32 %v771_v24, %v771_v24 }
 0x6dc   :  { %v639_v26 = vpop.f32.mrf.mxu2  ;;  %834 = vmatpush.msrb.mxu2 %v809_v36 }
 0x6dd   :  { %v775_v27 = vsel %vm141_vm0, %v773_v25, 0.0  ;;  %v643_v29 = vadd.f32 %v639_v26, %v515_v28 }
 0x6de   :  { %776 = vadd.xlane.f32.xlu1 %v775_v27 }
 0x6e0   :  { %v766_v30 = vpop.f32.mrf.mxu0 }
 0x6e1   :  { %v770_v31 = vadd.f32 %v766_v30, %v643_v29 }
 0x6e3   :  { %v772_v32 = vadd.f32 %v770_v31, %v1354_v2 }
 0x6e5   :  { %v774_v33 = vmul.f32 %v772_v32, %v772_v32 }
 0x6e7   :  { %v778_v55 = vsel %vm141_vm0, %v774_v33, 0.0 }
 0x6e8   :  { %779 = vadd.xlane.f32.xlu0 %v778_v55 }
 0x751   :  { %v777_v37 = vpop.xlane.xlu1 %776 }
 0x752   :  { %v781_v62 = vmul.f32 %v777_v37, %v1372_v16 }
 0x754   :  { %v783_v39 = vadd.f32 1e-06, %v781_v62 }
 0x756   :  { %1048 = vrsqrt.f32 %v783_v39  ;;  %vm791_vm12 = vweird.f32 %v783_v39 }
 0x75b   :  { %v780_v41 = vpop.xlane.xlu0 %779 }
 0x75c   :  { %v1049_v40 = vpop.eup %1048  ;;  %v782_v42 = vmul.f32 %v780_v41, %v1372_v16 }
 0x75d   :  { %v786_v2 = vmul.f32 %v1049_v40, %v783_v39  ;;  %vm792_vm11 = vweird.f32 %v1049_v40 }
 0x75e   :  { %v784_v44 = vadd.f32 1e-06, %v782_v42  ;;  %vm793_vm13 = vmor %vm791_vm12, %vm792_vm11 }
 0x75f   :  { %v787_v43 = vmul.f32 %v1049_v40, %v786_v2 }
 0x760   :  { %1050 = vrsqrt.f32 %v784_v44  ;;  %vm801_vm15 = vweird.f32 %v784_v44 }
 0x761   :  { %v788_v45 = vmul.f32 0.5, %v787_v43 }
 0x763   :  { %v789_v46 = vsub.f32 1.5, %v788_v45 }
 0x765   :  { %v790_v47 = vmul.f32 %v1049_v40, %v789_v46 }
 0x766   :  { %v1051_v48 = vpop.eup %1050 }
 0x767   :  { %v794_v49 = vsel %vm793_vm13, %v1049_v40, %v790_v47  ;;  %v796_v51 = vmul.f32 %v1051_v48, %v784_v44  ;;  %vm802_vm14 = vweird.f32 %v1051_v48 }
 0x768   :  { %v805_v50 = vmul.f32 %v794_v49, %v771_v24  ;;  %vm803_vm1 = vmor %vm801_vm15, %vm802_vm14 }
 0x769   :  { %v797_v53 = vmul.f32 %v1051_v48, %v796_v51 }
 0x76a   :  { %v807_v52 = vmul.f32 %v1400_v38, %v805_v50 }
 0x76b   :  { %v798_v54 = vmul.f32 0.5, %v797_v53 }
 0x76c   :  { %963 = vmatmul.msk.f32.vlgmr.msrb.gmra.mxu2 %vm141_vm0, %v807_v52 }
 0x76d   :  { %v799_v16 = vsub.f32 1.5, %v798_v54 }
 0x76f   :  { %v800_v56 = vmul.f32 %v1051_v48, %v799_v16 }
 0x771   :  { %v804_v1 = vsel %vm803_vm1, %v1051_v48, %v800_v56 }
 0x772   :  { %v806_v57 = vmul.f32 %v804_v1, %v772_v32 }
 0x774   :  { %v808_v58 = vmul.f32 %v1400_v38, %v806_v57  ;;  %v868_v38 = vld [vmem:[%s1561_s9 + $0x20] sm:$0xff]  ;;  %s1258_s9 = smov [#allocation13]  }
 0x775   :  { %889 = vmatpush.msrb.mxu1 %v868_v38  ;;  %s909_s8 = sshll.u32 %s1258_s9, 4  ;;  %s910_s8 = int_to_ptr.vmem [resolvable:$true] %s909_s8 }
 0x776   :  { %964 = vmatmul.msk.f32.gmra.mxu2 %vm141_vm0, %v808_v58 }
 0x777   :  { %890 = vmatpush.msrb.mxu1 %v867_v3 }
 0x779   :  { %891 = vmatpush.msrb.mxu1 %v866_v4 }
 0x77b   :  { %892 = vmatpush.msrb.mxu1 %v865_v5 }
 0x77d   :  { %893 = vmatpush.msrb.mxu1 %v864_v9 }
 0x7ef   :  { %v836_v59 = vpop.f32.mrf.mxu2 }
 0x7f0   :  { %856 = vrot.lane.b32.xlu2 %v836_v59, %s1248_s5  ;;  %v842_v7 = vsub.f32 0.0, %v836_v59 }
 0x7f2   :  { %v844_v10 = vmul.f32 1.442695, %v842_v7 }
 0x7f4   :  { %1052 = vpow2.f32 %v844_v10 }
 0x7f9   :  { %v839_v6 = vpop.f32.mrf.mxu2 }
 0x7fa   :  { %858 = vrot.lane.b32.xlu0 %v839_v6, %s1248_s5  ;;  %v1053_v11 = vpop.eup %1052  ;;  %v843_v8 = vsub.f32 0.0, %v839_v6 }
 0x7fb   :  { %v848_v13 = vadd.f32 1.0, %v1053_v11 }
 0x7fc   :  { %v846_v19 = vmul.f32 1.442695, %v843_v8 }
 0x7fd   :  { %1054 = vrcp.f32 %v848_v13 }
 0x7fe   :  { %1056 = vpow2.f32 %v846_v19 }
 0x803   :  { %v1055_v14 = vpop.eup %1054 }
 0x804   :  { %v852_v15 = vmul.f32 %v1055_v14, %v836_v59  ;;  %v1057_v20 = vpop.eup %1056 }
 0x805   :  { %v849_v21 = vadd.f32 1.0, %v1057_v20 }
 0x807   :  { %1058 = vrcp.f32 %v849_v21 }
 0x80d   :  { %v1059_v12 = vpop.eup %1058 }
 0x80e   :  { %v853_v22 = vmul.f32 %v1059_v12, %v839_v6 }
 0x84a   :  { %v857_v17 = vpop.permute.xlu2 %856 }
 0x84b   :  { %v862_v18 = vmul.f32 %v857_v17, %v852_v15 }
 0x84d   :  { %965 = vmatmul.msk.f32.vlgmr.msrb.gmra.mxu1 %vm231_vm8, %v862_v18 }
 0x86c   :  { %v859_v23 = vpop.permute.xlu0 %858 }
 0x86d   :  { %v863_v24 = vmul.f32 %v859_v23, %v853_v22 }
 0x86f   :  { %966 = vmatmul.msk.f32.gmra.mxu1 %vm231_vm8, %v863_v24 }
 0x8ca   :  { %v895_v25 = vpop.f32.mrf.mxu1 }
 0x8cb   :  { %v901_v26 = vadd.f32 %v895_v25, %v807_v52 }
 0x8cd   :  { %903 = vst.msk [vmem:[#allocation13] sm:$0xff] %vm141_vm0, %v901_v26 }
 0x8ec   :  { %v898_v27 = vpop.f32.mrf.mxu1 }
 0x8ed   :  { %v902_v28 = vadd.f32 %v898_v27, %v808_v58 }
 0x8ef   :  { %904 = vst.msk [vmem:[#allocation13 + $0x8] sm:$0xff] %vm141_vm0, %v902_v28 }
 0x8f0   :  { %917 = dma.vmem_to_hbm [thread:$0]  %s910_s8, 256, %s912_s23, [#allocation4], %s1239_s21, %s1239_s21, %s1240_s22  }
 0x8f1   :  { %1236 = dma.done.wait [#allocation4], 256  }
 0x8f2   :  { %1237 = vsyncadd [#allocation4], 4294967040 }
 0x8f3   :  { %922 = vsyncpa [#allocation3], 1 }
 0x8f4   :  { %923 = vsyncpa [#allocation6], 1 }
 0x8f5   :  { %924 = vsyncpa [#allocation9], 1 }
 0x8f6   :  { %925 = vsyncpa [#allocation12], 1 }
 0x8f7   :  { %926 = vsyncpa [#allocation4], 1 }

</bundles_post_ra>
